<compile_context>
chip_gen: v7x
topology: tpu7x:2x2x1
jax: 0.10.0
libtpu: 0.0.40
codegen_flags: <defaults>
</compile_context>

<pallas_src>
import numpy as np
import jax
import jax.numpy as jnp
from jax import lax
from jax.experimental import pallas as pl
from jax.experimental.pallas import tpu as pltpu


VMEM_SPEC = pl.BlockSpec(memory_space=pltpu.MemorySpace.VMEM)


def _round_up(x, m):
    return ((x + m - 1) // m) * m


# ------------------ Kernel 1: encoder (region-streamed) + fused LSTM init state ------------------

def encoder_init_kernel(feat_ref, w_emb_ref, b_emb_ref, w_hc_ref, b_hc_ref,
                        enc_ref, hc_ref, acc_ref):
    r = pl.program_id(0)

    @pl.when(r == 0)
    def _():
        acc_ref[...] = jnp.zeros_like(acc_ref)

    # stream region tiles; accumulate the sum in f32 (1/N is folded into w_emb,
    # zero-padded regions contribute nothing).
    acc_ref[...] += jnp.sum(feat_ref[...], axis=1)

    @pl.when(r == pl.num_programs(0) - 1)
    def _():
        sum_feat = acc_ref[...].astype(jnp.bfloat16)                          # (B, 2048)
        enc = (jnp.dot(sum_feat, w_emb_ref[...],
                       preferred_element_type=jnp.float32) + b_emb_ref[...])  # (B, E)
        enc_ref[...] = enc
        # init_hidden_state: mean over the single pixel dim == enc itself.
        # init_h / init_c fused into a single (E, 2E) matmul; emitted as one
        # lane-dense (B, 2E) slab and split in the wrapper.
        hc_ref[...] = (jnp.dot(enc.astype(jnp.bfloat16), w_hc_ref[...],
                               preferred_element_type=jnp.float32) + b_hc_ref[...])


def encoder_init(features, p, *, tile_r=8):
    B, N, F = features.shape
    E = p["w_emb"].shape[1]

    Np = _round_up(N, tile_r)
    feat_p = jnp.pad(features, ((0, 0), (0, Np - N), (0, 0))).astype(jnp.float32)

    # fold the 1/N mean scale into w_emb (wrapper-side, one time); bf16 weights,
    # f32 biases / accumulation.
    w_emb = (p["w_emb"] * (1.0 / N)).astype(jnp.bfloat16)
    b_emb = p["b_emb"].astype(jnp.float32)
    w_hc = jnp.concatenate([p["w_init_h"], p["w_init_c"]], axis=1).astype(jnp.bfloat16)
    b_hc = jnp.concatenate([p["b_init_h"], p["b_init_c"]], axis=1).astype(jnp.float32)

    enc, hc = pl.pallas_call(
        encoder_init_kernel,
        out_shape=(jax.ShapeDtypeStruct((B, E), jnp.float32),
                   jax.ShapeDtypeStruct((B, 2 * E), jnp.float32)),
        grid=(Np // tile_r,),
        in_specs=[pl.BlockSpec((B, tile_r, F), lambda r: (0, r, 0)),
                  pl.BlockSpec((F, E), lambda r: (0, 0)),
                  pl.BlockSpec((1, E), lambda r: (0, 0)),
                  pl.BlockSpec((E, 2 * E), lambda r: (0, 0)),
                  pl.BlockSpec((1, 2 * E), lambda r: (0, 0))],
        out_specs=(pl.BlockSpec((B, E), lambda r: (0, 0)),
                   pl.BlockSpec((B, 2 * E), lambda r: (0, 0))),
        scratch_shapes=[pltpu.VMEM((B, F), jnp.float32)],
        compiler_params=pltpu.CompilerParams(dimension_semantics=("arbitrary",)),
    )(feat_p, w_emb, b_emb, w_hc, b_hc)
    return enc, hc[:, :E], hc[:, E:]


# ------------- Kernel 2: full T-step recurrence (fused gate + LSTMCell) in one call -------------

def decoder_recurrent_kernel(enc_ref, u_ref, h0_ref, c0_ref,
                             w_h_ref, b_h_ref, w_awe_ref,
                             hall_ref, h_s, c_s):
    T = u_ref.shape[0]
    B, E = enc_ref.shape

    enc = enc_ref[...]                       # (B, E): the single attention "pixel"
    w_h = w_h_ref[...]                       # (E, 5E) = [w_fb | w_hh], bf16
    b_h = b_h_ref[...]                       # (1, 5E) = [b_fb | b_hh], f32
    w_awe = w_awe_ref[...]                   # (E, 4E) = awe rows of w_ih, bf16

    h_s[...] = h0_ref[...]
    c_s[...] = c0_ref[...]

    def body(t, carry):
        h = h_s[...]
        c = c_s[...]

        # One fused MXU pass over h: [f_beta gate | LSTM hidden gates].
        hz = (jnp.dot(h.astype(jnp.bfloat16), w_h,
                      preferred_element_type=jnp.float32) + b_h)              # (B, 5E)

        # Attention with num_pixels == 1: softmax over a length-1 axis is exactly
        # 1.0, so the attention-weighted encoding is just `enc` (then gated).
        gate = jax.nn.sigmoid(hz[:, :E])
        awe = gate * enc                                                      # (B, E)

        # Second MXU pass: awe contribution to the gates. The embedding
        # contribution u[t] (emb @ w_ih[:E] + b_ih) was hoisted out of the loop.
        gz = jnp.dot(awe.astype(jnp.bfloat16), w_awe,
                     preferred_element_type=jnp.float32)                      # (B, 4E)
        gates = u_ref[t] + hz[:, E:] + gz                                     # (B, 4E)

        # PyTorch LSTMCell gate order (i, f, g, o).
        # NOTE: slices are 128-aligned once E is a multiple of 128 (real models);
        # at the toy E=32 they lower to masked stores, which is acceptable.
        i_g = jax.nn.sigmoid(gates[:, 0 * E:1 * E])
        f_g = jax.nn.sigmoid(gates[:, 1 * E:2 * E])
        g_g = jnp.tanh(gates[:, 2 * E:3 * E])
        o_g = jax.nn.sigmoid(gates[:, 3 * E:4 * E])
        c_new = f_g * c + i_g * g_g
        h_new = o_g * jnp.tanh(c_new)

        h_s[...] = h_new
        c_s[...] = c_new
        hall_ref[t] = h_new                                                   # record h history
        return carry

    unroll = True if T <= 16 else 8
    lax.fori_loop(0, T, body, 0, unroll=unroll)


def decoder_recurrent(enc, u_tbe, h0, c0, p):
    T, B, _ = u_tbe.shape
    E = enc.shape[1]
    # wrapper-side one-time fusion: [f_beta | hidden-part of LSTM] weights / biases
    w_h = jnp.concatenate([p["w_fb"], p["w_hh"]], axis=1).astype(jnp.bfloat16)   # (E, 5E)
    b_h = jnp.concatenate([p["b_fb"], p["b_hh"]], axis=1).astype(jnp.float32)    # (1, 5E)
    w_awe = p["w_ih"][E:, :].astype(jnp.bfloat16)                                # (E, 4E)
    # TODO(synk): for very long T / large B*E, stream u_tbe and hall through HBM
    # with emit_pipeline instead of whole-array VMEM residency.
    return pl.pallas_call(
        decoder_recurrent_kernel,
        out_shape=jax.ShapeDtypeStruct((T, B, E), jnp.float32),
        in_specs=[VMEM_SPEC] * 7,
        out_specs=VMEM_SPEC,
        scratch_shapes=[pltpu.VMEM((B, E), jnp.float32),
                        pltpu.VMEM((B, E), jnp.float32)],
    )(enc, u_tbe, h0, c0, w_h, b_h, w_awe)


# -------------- Kernel 3: generic tiled linear (used for emb projection and fc->vocab) --------------

def linear_kernel(x_ref, w_ref, b_ref, o_ref):
    o_ref[...] = (jnp.dot(x_ref[...], w_ref[...],
                          preferred_element_type=jnp.float32)
                  + b_ref[...]).astype(o_ref.dtype)


def linear_tiled(x, w, b, *, tm=256, tn=512):
    """y = x @ w + b, tiled over (M, N); bf16 operands, f32 accumulation."""
    M, K = x.shape
    N = w.shape[1]
    tm = min(tm, _round_up(M, 8))
    tn = min(tn, _round_up(N, 128))
    Mp = _round_up(M, tm)
    Np = _round_up(N, tn)

    x_p = jnp.pad(x, ((0, Mp - M), (0, 0))).astype(jnp.bfloat16)
    w_p = jnp.pad(w, ((0, 0), (0, Np - N))).astype(jnp.bfloat16)
    b_p = jnp.pad(b, ((0, 0), (0, Np - N))).astype(jnp.float32)

    # TODO(synk): tile K as well (grid axis + f32 accumulator scratch) once
    # K (= embed_size) no longer fits VMEM alongside the (K, tn) weight tile.
    out = pl.pallas_call(
        linear_kernel,
        out_shape=jax.ShapeDtypeStruct((Mp, Np), jnp.float32),
        grid=(Mp // tm, Np // tn),
        in_specs=[pl.BlockSpec((tm, K), lambda i, j: (i, 0)),
                  pl.BlockSpec((K, tn), lambda i, j: (0, j)),
                  pl.BlockSpec((1, tn), lambda i, j: (0, j))],
        out_specs=pl.BlockSpec((tm, tn), lambda i, j: (i, j)),
        compiler_params=pltpu.CompilerParams(
            dimension_semantics=("parallel", "parallel")),
    )(x_p, w_p, b_p)
    return out[:M, :N]


# ----------------------------- forward wrapper -----------------------------------

def soft_attention_forward(p, features, captions, lengths):
    lengths_np = np.asarray(lengths)
    T = int(lengths_np.max())
    B = features.shape[0]
    E = p["w_emb"].shape[1]

    # encoder + LSTM initial state (region-streamed Pallas kernel)
    enc, h0, c0 = encoder_init(features, p)

    # sort batch by descending caption length (glue; matches torch.sort descending).
    # Row-wise linears commute with the permutation, so sorting after the encoder
    # kernel is equivalent to the PyTorch order.
    order = np.argsort(-lengths_np, kind="stable")
    enc = enc[order]
    h0 = h0[order]
    c0 = c0[order]

    # pad batch to a multiple of 8 sublanes for the recurrent kernel; padded rows
    # compute garbage that is never selected by the packing gather.
    Bp = max(8, _round_up(B, 8))
    padB = Bp - B
    enc_p = jnp.pad(enc, ((0, padB), (0, 0)))
    h0_p = jnp.pad(h0, ((0, padB), (0, 0)))
    c0_p = jnp.pad(c0, ((0, padB), (0, 0)))

    # embedding lookup (glue); slice to T steps, time-major (T, Bp, E)
    emb = jnp.take(p["embedding"], captions, axis=0)                 # (B, L, E)
    emb_tbe = jnp.transpose(emb[order][:, :T, :], (1, 0, 2))         # (T, B, E)
    emb_tbe = jnp.pad(emb_tbe, ((0, 0), (0, padB), (0, 0)))          # (T, Bp, E)

    # hoisted embedding projection: one lane-dense matmul off the serial path
    u_flat = linear_tiled(emb_tbe.reshape(T * Bp, E), p["w_ih"][:E, :], p["b_ih"])
    u_tbe = u_flat.reshape(T, Bp, 4 * E)

    # fused recurrence: gate + LSTMCell for all T steps in one kernel invocation
    h_all = decoder_recurrent(enc_p, u_tbe, h0_p, c0_p, p)           # (T, Bp, E)

    # pack_padded_sequence(..., batch_first=True)[0]: gather packed rows FIRST,
    # then run fc only on rows that are actually kept.
    idx = np.concatenate(
        [t * Bp + np.arange(int(np.sum(lengths_np > t))) for t in range(T)]
    ).astype(np.int32)
    h_packed = jnp.take(h_all.reshape(T * Bp, E), jnp.asarray(idx), axis=0)

    # tiled fc -> vocab over packed rows only
    return linear_tiled(h_packed, p["w_fc"], p["b_fc"])              # (sum(lengths), V)


# ----------------------------- parameter init ------------------------------

def make_params(key, embed_size, hidden_size, vocab_size, feat_dim=2048):
    E, H, V = embed_size, hidden_size, vocab_size
    keys = jax.random.split(key, 24)
    k = iter(keys)

    def lin(kw, kb, din, dout, scale=0.05):
        return (jax.random.normal(kw, (din, dout), jnp.float32) * scale,
                jax.random.normal(kb, (1, dout), jnp.float32) * scale)

    p = {}
    # EncoderCNN.embed : Linear(2048, E)
    p["w_emb"], p["b_emb"] = lin(next(k), next(k), feat_dim, E)
    # DecoderRNN.init_h / init_c : Linear(E, E)
    p["w_init_h"], p["b_init_h"] = lin(next(k), next(k), E, E)
    p["w_init_c"], p["b_init_c"] = lin(next(k), next(k), E, E)
    # Embedding(vocab, E) with padding_idx=0
    emb_tab = jax.random.normal(next(k), (V, E), jnp.float32) * 0.05
    p["embedding"] = emb_tab.at[0].set(0.0)
    # Attention(E, E, H) — mathematically dead for num_pixels==1 (softmax over a
    # length-1 axis is exactly 1), so these params are created for parity with the
    # PyTorch module but never touched by the kernels.
    p["w_ea"], p["b_ea"] = lin(next(k), next(k), E, H)      # encoder_att
    p["w_da"], p["b_da"] = lin(next(k), next(k), E, H)      # decoder_att
    p["w_fa"], p["b_fa"] = lin(next(k), next(k), H, 1)      # full_att
    # f_beta : Linear(E, E)
    p["w_fb"], p["b_fb"] = lin(next(k), next(k), E, E)
    # LSTMCell(2E, E)  (weights stored transposed: (in, 4E))
    p["w_ih"], p["b_ih"] = lin(next(k), next(k), 2 * E, 4 * E)
    p["w_hh"], p["b_hh"] = lin(next(k), next(k), E, 4 * E)
    # fc : Linear(E, V)
    p["w_fc"], p["b_fc"] = lin(next(k), next(k), E, V)
    return p


# ----------------------------- main ----------------------------------------

if __name__ == "__main__":
    EMBED_SIZE = 32      # embed_size
    HIDDEN_SIZE = 32     # hidden_size (attention dim)
    VOCAB_SIZE = 128     # vocab_size
    B = 2                # batch
    N_REG = 4            # image regions before mean-pooling
    FEAT_DIM = 2048      # raw CNN feature dim
    L = 6                # caption length (padded)
    lengths = [6, 4]     # descending (as required by pack_padded_sequence)

    key = jax.random.PRNGKey(0)
    k_param, k_feat, k_cap = jax.random.split(key, 3)

    params = make_params(k_param, EMBED_SIZE, HIDDEN_SIZE, VOCAB_SIZE, FEAT_DIM)
    features = jax.random.normal(k_feat, (B, N_REG, FEAT_DIM), jnp.float32)
    captions = jax.random.randint(k_cap, (B, L), 1, VOCAB_SIZE).astype(jnp.int32)

    out = soft_attention_forward(params, features, captions, lengths)
    out = jax.block_until_ready(out)

    expected_rows = int(np.sum(lengths))
    assert out.shape == (expected_rows, VOCAB_SIZE), out.shape
    assert bool(jnp.all(jnp.isfinite(out)))
    print("KERNEL_OK")
</pallas_src>

<mosaic_0001>
module attributes {stable_mosaic.version = 11 : i64} {
  func.func @encoder_init_kernel(%arg0: i32, %arg1: memref<2x8x2048xf32, #tpu.memory_space<vmem>>, %arg2: memref<2048x32xbf16, #tpu.memory_space<vmem>>, %arg3: memref<1x32xf32, #tpu.memory_space<vmem>>, %arg4: memref<32x64xbf16, #tpu.memory_space<vmem>>, %arg5: memref<1x64xf32, #tpu.memory_space<vmem>>, %arg6: memref<2x32xf32, #tpu.memory_space<vmem>>, %arg7: memref<2x64xf32, #tpu.memory_space<vmem>>, %arg8: memref<2x2048xf32, #tpu.memory_space<vmem>>) attributes {dimension_semantics = [#tpu.dimension_semantics<arbitrary>], iteration_bounds = array<i64: 1>, scalar_prefetch = 0 : i64, scratch_operands = 1 : i64, tpu.core_type = #tpu.core_type<tc>, window_params = [{transform_indices = @transform_0, window_bounds = array<i64: 2, 8, 2048>}, {pipeline_mode = #tpu.pipeline_mode<synchronous>, transform_indices = @transform_1, window_bounds = array<i64: 2048, 32>}, {pipeline_mode = #tpu.pipeline_mode<synchronous>, transform_indices = @transform_2, window_bounds = array<i64: 1, 32>}, {pipeline_mode = #tpu.pipeline_mode<synchronous>, transform_indices = @transform_3, window_bounds = array<i64: 32, 64>}, {pipeline_mode = #tpu.pipeline_mode<synchronous>, transform_indices = @transform_4, window_bounds = array<i64: 1, 64>}, {pipeline_mode = #tpu.pipeline_mode<synchronous>, transform_indices = @transform_5, window_bounds = array<i64: 2, 32>}, {pipeline_mode = #tpu.pipeline_mode<synchronous>, transform_indices = @transform_6, window_bounds = array<i64: 2, 64>}]} {
    %c0_i32 = arith.constant 0 : i32
    %0 = arith.cmpi eq, %arg0, %c0_i32 : i32
    %1 = arith.extui %0 : i1 to i32
    %c0_i32_0 = arith.constant 0 : i32
    %2 = arith.cmpi ne, %1, %c0_i32_0 : i32
    scf.if %2 {
      %cst_9 = arith.constant 0.000000e+00 : f32
      %11 = vector.broadcast %cst_9 : f32 to vector<2x2048xf32>
      %c0_10 = arith.constant 0 : index
      %c0_11 = arith.constant 0 : index
      %12 = vector.load %arg8[%c0_10, %c0_11] : memref<2x2048xf32, #tpu.memory_space<vmem>>, vector<2x2048xf32>
      tpu.vector_store %arg8[%c0_10, %c0_11], %11 {strides = array<i32>} : memref<2x2048xf32, #tpu.memory_space<vmem>>, vector<2x2048xf32>,
    } else {
    }
    %c0 = arith.constant 0 : index
    %c0_1 = arith.constant 0 : index
    %3 = vector.load %arg8[%c0, %c0_1] : memref<2x2048xf32, #tpu.memory_space<vmem>>, vector<2x2048xf32>
    %c0_2 = arith.constant 0 : index
    %c0_3 = arith.constant 0 : index
    %c0_4 = arith.constant 0 : index
    %4 = vector.load %arg1[%c0_2, %c0_3, %c0_4] : memref<2x8x2048xf32, #tpu.memory_space<vmem>>, vector<2x8x2048xf32>
    %cst = arith.constant dense<0.000000e+00> : vector<2x2048xf32>
    %5 = vector.multi_reduction <add>, %4, %cst [1] : vector<2x8x2048xf32> to vector<2x2048xf32>
    %6 = arith.addf %3, %5 : vector<2x2048xf32>
    %c0_5 = arith.constant 0 : index
    %c0_6 = arith.constant 0 : index
    %7 = vector.load %arg8[%c0_5, %c0_6] : memref<2x2048xf32, #tpu.memory_space<vmem>>, vector<2x2048xf32>
    tpu.vector_store %arg8[%c0_5, %c0_6], %6 {strides = array<i32>} : memref<2x2048xf32, #tpu.memory_space<vmem>>, vector<2x2048xf32>,
    %c0_i32_7 = arith.constant 0 : i32
    %8 = arith.cmpi eq, %arg0, %c0_i32_7 : i32
    %9 = arith.extui %8 : i1 to i32
    %c0_i32_8 = arith.constant 0 : i32
    %10 = arith.cmpi ne, %9, %c0_i32_8 : i32
    scf.if %10 {
      %c0_9 = arith.constant 0 : index
      %c0_10 = arith.constant 0 : index
      %11 = vector.load %arg8[%c0_9, %c0_10] : memref<2x2048xf32, #tpu.memory_space<vmem>>, vector<2x2048xf32>
      %12 = arith.truncf %11 : vector<2x2048xf32> to vector<2x2048xbf16>
      %c0_11 = arith.constant 0 : index
      %c0_12 = arith.constant 0 : index
      %13 = vector.load %arg2[%c0_11, %c0_12] : memref<2048x32xbf16, #tpu.memory_space<vmem>>, vector<2048x32xbf16>
      %cst_13 = arith.constant dense<0.000000e+00> : vector<2x32xf32>
      %14 = tpu.matmul %12, %13, %cst_13 {dimension_numbers = #tpu.dot_dimension_numbers<[1], [0], [0], [1], [0, 0, 1, 1], [], []>} : vector<2x2048xbf16>, vector<2048x32xbf16>, vector<2x32xf32> -> vector<2x32xf32>
      %c0_14 = arith.constant 0 : index
      %c0_15 = arith.constant 0 : index
      %15 = vector.load %arg3[%c0_14, %c0_15] : memref<1x32xf32, #tpu.memory_space<vmem>>, vector<1x32xf32>
      %16 = vector.broadcast %15 : vector<1x32xf32> to vector<2x32xf32>
      %17 = arith.addf %14, %16 : vector<2x32xf32>
      %c0_16 = arith.constant 0 : index
      %c0_17 = arith.constant 0 : index
      %18 = vector.load %arg6[%c0_16, %c0_17] : memref<2x32xf32, #tpu.memory_space<vmem>>, vector<2x32xf32>
      tpu.vector_store %arg6[%c0_16, %c0_17], %17 {strides = array<i32>} : memref<2x32xf32, #tpu.memory_space<vmem>>, vector<2x32xf32>,
      %19 = arith.truncf %17 : vector<2x32xf32> to vector<2x32xbf16>
      %c0_18 = arith.constant 0 : index
      %c0_19 = arith.constant 0 : index
      %20 = vector.load %arg4[%c0_18, %c0_19] : memref<32x64xbf16, #tpu.memory_space<vmem>>, vector<32x64xbf16>
      %cst_20 = arith.constant dense<0.000000e+00> : vector<2x64xf32>
      %21 = tpu.matmul %19, %20, %cst_20 {dimension_numbers = #tpu.dot_dimension_numbers<[1], [0], [0], [1], [0, 0, 1, 1], [], []>} : vector<2x32xbf16>, vector<32x64xbf16>, vector<2x64xf32> -> vector<2x64xf32>
      %c0_21 = arith.constant 0 : index
      %c0_22 = arith.constant 0 : index
      %22 = vector.load %arg5[%c0_21, %c0_22] : memref<1x64xf32, #tpu.memory_space<vmem>>, vector<1x64xf32>
      %23 = vector.broadcast %22 : vector<1x64xf32> to vector<2x64xf32>
      %24 = arith.addf %21, %23 : vector<2x64xf32>
      %c0_23 = arith.constant 0 : index
      %c0_24 = arith.constant 0 : index
      %25 = vector.load %arg7[%c0_23, %c0_24] : memref<2x64xf32, #tpu.memory_space<vmem>>, vector<2x64xf32>
      tpu.vector_store %arg7[%c0_23, %c0_24], %24 {strides = array<i32>} : memref<2x64xf32, #tpu.memory_space<vmem>>, vector<2x64xf32>,
    } else {
    }
    return
  }
  func.func @transform_0(%arg0: i32) -> (i32, i32, i32) {
    %c0_i32 = arith.constant 0 : i32
    %c0_i32_0 = arith.constant 0 : i32
    %c0_i32_1 = arith.constant 0 : i32
    return %c0_i32, %arg0, %c0_i32_0 : i32, i32, i32
  }
  func.func @transform_1(%arg0: i32) -> (i32, i32) {
    %c0_i32 = arith.constant 0 : i32
    %c0_i32_0 = arith.constant 0 : i32
    %c0_i32_1 = arith.constant 0 : i32
    return %c0_i32, %c0_i32_0 : i32, i32
  }
  func.func @transform_2(%arg0: i32) -> (i32, i32) {
    %c0_i32 = arith.constant 0 : i32
    %c0_i32_0 = arith.constant 0 : i32
    %c0_i32_1 = arith.constant 0 : i32
    return %c0_i32, %c0_i32_0 : i32, i32
  }
  func.func @transform_3(%arg0: i32) -> (i32, i32) {
    %c0_i32 = arith.constant 0 : i32
    %c0_i32_0 = arith.constant 0 : i32
    %c0_i32_1 = arith.constant 0 : i32
    return %c0_i32, %c0_i32_0 : i32, i32
  }
  func.func @transform_4(%arg0: i32) -> (i32, i32) {
    %c0_i32 = arith.constant 0 : i32
    %c0_i32_0 = arith.constant 0 : i32
    %c0_i32_1 = arith.constant 0 : i32
    return %c0_i32, %c0_i32_0 : i32, i32
  }
  func.func @transform_5(%arg0: i32) -> (i32, i32) {
    %c0_i32 = arith.constant 0 : i32
    %c0_i32_0 = arith.constant 0 : i32
    %c0_i32_1 = arith.constant 0 : i32
    return %c0_i32, %c0_i32_0 : i32, i32
  }
  func.func @transform_6(%arg0: i32) -> (i32, i32) {
    %c0_i32 = arith.constant 0 : i32
    %c0_i32_0 = arith.constant 0 : i32
    %c0_i32_1 = arith.constant 0 : i32
    return %c0_i32, %c0_i32_0 : i32, i32
  }
}

</mosaic_0001>

<bundles_post_ra>
// kernel: tpu_custom_call.1
= control target key start
LH: loop header
LB: loop body
LE: loop exit
PB: predicated region body
PF: predicated region fallthrough
CT: control target
= control target key end

     0   :  { %12 = vsyncpa [#allocation4], 0  ;;  %v298_v29 = vlaneseq  ;;  %v2540_v48 = vmov 1983009808   ;;  %vm434_vm0 = vcmask 1041409   ;;  %vm436_vm1 = vcmask 1043459   ;;  %s3141_s0 = inlined_call_operand.vmem [shape: f32[2,8,2048], index: 0, kind: input, shape index: {}]   ;;  %s3142_s1 = inlined_call_operand.vmem [shape: bf16[2048,32], index: 1, kind: input, shape index: {}]   ;;  %s3143_s2 = inlined_call_operand.vmem [shape: f32[1,32], index: 2, kind: input, shape index: {}]   ;;  %s3144_s3 = inlined_call_operand.vmem [shape: bf16[32,64], index: 3, kind: input, shape index: {}]   ;;  %s3145_s4 = inlined_call_operand.vmem [shape: f32[1,64], index: 4, kind: input, shape index: {}]   ;;  %s3146_s5 = inlined_call_operand.hbm [shape: f32[2,32], index: 5, kind: output, shape index: {0}]   ;;  %s3147_s6 = inlined_call_operand.hbm [shape: f32[2,64], index: 6, kind: output, shape index: {1}]  }
   0x1   :  { %v2362_v0 = vld [vmem:[%s3142_s1 + $0x40] sm:$0xff]   ;;  %v2366_v4 = vld [vmem:[%s3142_s1 + $0x48] sm:$0xff]   ;;  %v2370_v8 = vld [vmem:[%s3142_s1 + $0x50] sm:$0xff]   ;;  %v296_v49 = vunpack.c.l.s4 %v2540_v48  ;;  %vm438_vm2 = vcmask 1045509   ;;  %vm440_vm3 = vcmask 1047559  }
   0x2   :  { %v2363_v1 = vld [vmem:[%s3142_s1 + $0xc0] sm:$0xff]   ;;  %2170 = vmatprep.subr.bf16.mxu0 %v2362_v0  ;;  %v2367_v5 = vld [vmem:[%s3142_s1 + $0xc8] sm:$0xff]   ;;  %v2371_v9 = vld [vmem:[%s3142_s1 + $0xd0] sm:$0xff]   ;;  %v2685_v36 = vshrl.u32 %v298_v29, 7 }
   0x3   :  { %v2364_v2 = vld [vmem:[%s3142_s1] sm:$0xff]   ;;  %2192 = vmatprep.subr.bf16.mxu1 %v2363_v1  ;;  %v2368_v6 = vld [vmem:[%s3142_s1 + $0x8] sm:$0xff]   ;;  %v2372_v10 = vld [vmem:[%s3142_s1 + $0x10] sm:$0xff]  }
   0x4   :  { %v2365_v3 = vld [vmem:[%s3142_s1 + $0x80] sm:$0xff]   ;;  %2171 = vmatpush3.bf16.msra.mxu0 %v2364_v2  ;;  %v2369_v7 = vld [vmem:[%s3142_s1 + $0x88] sm:$0xff]   ;;  %v2373_v11 = vld [vmem:[%s3142_s1 + $0x90] sm:$0xff]  }
   0x5   :  { %2193 = vmatpush3.bf16.msra.mxu1 %v2365_v3  ;;  %2172 = vmatprep.subr.bf16.mxu0 %v2366_v4  ;;  %v2374_v12 = vld [vmem:[%s3142_s1 + $0x58] sm:$0xff]   ;;  %v2378_v16 = vld [vmem:[%s3142_s1 + $0x60] sm:$0xff]   ;;  %v2382_v20 = vld [vmem:[%s3142_s1 + $0x68] sm:$0xff]  }
   0x6   :  { %2194 = vmatprep.subr.bf16.mxu1 %v2367_v5  ;;  %v2375_v13 = vld [vmem:[%s3142_s1 + $0xd8] sm:$0xff]   ;;  %v2379_v17 = vld [vmem:[%s3142_s1 + $0xe0] sm:$0xff]   ;;  %v2383_v21 = vld [vmem:[%s3142_s1 + $0xe8] sm:$0xff]  }
   0x7   :  { %v2376_v14 = vld [vmem:[%s3142_s1 + $0x18] sm:$0xff]   ;;  %v2380_v18 = vld [vmem:[%s3142_s1 + $0x20] sm:$0xff]   ;;  %v2384_v22 = vld [vmem:[%s3142_s1 + $0x28] sm:$0xff]  }
   0x8   :  { %2173 = vmatpush3.bf16.msra.mxu0 %v2368_v6  ;;  %v2377_v15 = vld [vmem:[%s3142_s1 + $0x98] sm:$0xff]   ;;  %v2381_v19 = vld [vmem:[%s3142_s1 + $0xa0] sm:$0xff]   ;;  %v2385_v23 = vld [vmem:[%s3142_s1 + $0xa8] sm:$0xff]  }
   0x9   :  { %2195 = vmatpush3.bf16.msra.mxu1 %v2369_v7  ;;  %2174 = vmatprep.subr.bf16.mxu0 %v2370_v8  ;;  %v2386_v24 = vld [vmem:[%s3142_s1 + $0x70] sm:$0xff]   ;;  %v2390_v28 = vld [vmem:[%s3142_s1 + $0x78] sm:$0xff]   ;;  %v37_v33 = vld [vmem:[%s3141_s0] sm:$0xff] }
   0xa   :  { %2196 = vmatprep.subr.bf16.mxu1 %v2371_v9  ;;  %v2387_v25 = vld [vmem:[%s3142_s1 + $0xf0] sm:$0xff]   ;;  %v2391_v30 = vld [vmem:[%s3142_s1 + $0xf8] sm:$0xff]   ;;  %v38_v34 = vld [vmem:[%s3141_s0 + $0x8] sm:$0xff]  ;;  %v69_v40 = vrot.slane %v37_v33, 4 }
   0xb   :  { %v2388_v26 = vld [vmem:[%s3142_s1 + $0x30] sm:$0xff]   ;;  %v2392_v31 = vld [vmem:[%s3142_s1 + $0x38] sm:$0xff]   ;;  %v53_v38 = vld [vmem:[%s3141_s0 + $0x80] sm:$0xff]  ;;  %v75_v41 = vrot.slane %v38_v34, 4 }
   0xc   :  { %2175 = vmatpush3.bf16.msra.mxu0 %v2372_v10  ;;  %v2389_v27 = vld [vmem:[%s3142_s1 + $0xb0] sm:$0xff]   ;;  %v2393_v32 = vld [vmem:[%s3142_s1 + $0xb8] sm:$0xff]   ;;  %v54_v39 = vld [vmem:[%s3141_s0 + $0x88] sm:$0xff]  ;;  %v165_v46 = vrot.slane %v53_v38, 4  ;;  %v70_v51 = vadd.f32 %v69_v40, %v37_v33 }
   0xd   :  { %2197 = vmatpush3.bf16.msra.mxu1 %v2373_v11  ;;  %2176 = vmatprep.subr.bf16.mxu0 %v2374_v12  ;;  %v39_v35 = vld [vmem:[%s3141_s0 + $0x10] sm:$0xff]  ;;  %v40_v37 = vld [vmem:[%s3141_s0 + $0x18] sm:$0xff]  ;;  %v171_v47 = vrot.slane %v54_v39, 4  ;;  %v2394_v50 = vld [vmem:[%s3142_s1 + $0x140] sm:$0xff]   ;;  %v76_v52 = vadd.f32 %v75_v41, %v38_v34 }
   0xe   :  { %2198 = vmatprep.subr.bf16.mxu1 %v2375_v13  ;;  %v81_v42 = vrot.slane %v39_v35, 4  ;;  %v55_v43 = vld [vmem:[%s3141_s0 + $0x90] sm:$0xff]  ;;  %v56_v44 = vld [vmem:[%s3141_s0 + $0x98] sm:$0xff]  ;;  %v87_v45 = vrot.slane %v40_v37, 4  ;;  %v2395_v55 = vld [vmem:[%s3142_s1 + $0x1c0] sm:$0xff]   ;;  %v166_v57 = vadd.f32 %v165_v46, %v53_v38  ;;  %v71_v60 = vrot.slane %v70_v51, 2 }
   0xf   :  { %v177_v54 = vrot.slane %v55_v43, 4  ;;  %v172_v58 = vadd.f32 %v171_v47, %v54_v39  ;;  %v183_v59 = vrot.slane %v56_v44, 4  ;;  %v77_v61 = vrot.slane %v76_v52, 2 }
  0x10   :  { %2177 = vmatpush3.bf16.msra.mxu0 %v2376_v14  ;;  %v82_v53 = vadd.f32 %v81_v42, %v39_v35  ;;  %v88_v56 = vadd.f32 %v87_v45, %v40_v37  ;;  %v167_v1 = vrot.slane %v166_v57, 2  ;;  %v72_v4 = vadd.f32 %v71_v60, %v70_v51  ;;  %v2400_v60 = vld [vmem:[%s3142_s1 + $0x108] sm:$0xff]  }
  0x11   :  { %2199 = vmatpush3.bf16.msra.mxu1 %v2377_v15  ;;  %2178 = vmatprep.subr.bf16.mxu0 %v2378_v16  ;;  %v178_v63 = vadd.f32 %v177_v54, %v55_v43  ;;  %v173_v2 = vrot.slane %v172_v58, 2  ;;  %v184_v3 = vadd.f32 %v183_v59, %v56_v44  ;;  %v78_v5 = vadd.f32 %v77_v61, %v76_v52  ;;  %v2396_v52 = vld [vmem:[%s3142_s1 + $0x100] sm:$0xff]   ;;  %v2402_v61 = vld [vmem:[%s3142_s1 + $0x150] sm:$0xff]  }
  0x12   :  { %2200 = vmatprep.subr.bf16.mxu1 %v2379_v17  ;;  %v83_v62 = vrot.slane %v82_v53, 2  ;;  %v89_v0 = vrot.slane %v88_v56, 2  ;;  %v168_v9 = vadd.f32 %v167_v1, %v166_v57  ;;  %v73_v12 = vrot.slane %v72_v4, 1  ;;  %v43_v1 = vld [vmem:[%s3141_s0 + $0x30] sm:$0xff] }
  0x13   :  { %v179_v7 = vrot.slane %v178_v63, 2  ;;  %v174_v10 = vadd.f32 %v173_v2, %v172_v58  ;;  %v185_v11 = vrot.slane %v184_v3, 2  ;;  %v79_v13 = vrot.slane %v78_v5, 1  ;;  %v2399_v58 = vld [vmem:[%s3142_s1 + $0x1c8] sm:$0xff]   ;;  %v44_v2 = vld [vmem:[%s3141_s0 + $0x38] sm:$0xff] }
  0x14   :  { %2179 = vmatpush3.bf16.msra.mxu0 %v2380_v18  ;;  %v84_v6 = vadd.f32 %v83_v62, %v82_v53  ;;  %v90_v8 = vadd.f32 %v89_v0, %v88_v56  ;;  %v169_v17 = vrot.slane %v168_v9, 1  ;;  %v2398_v56 = vld [vmem:[%s3142_s1 + $0x148] sm:$0xff]  }
  0x15   :  { %2201 = vmatpush3.bf16.msra.mxu1 %v2381_v19  ;;  %2180 = vmatprep.subr.bf16.mxu0 %v2382_v20  ;;  %v180_v15 = vadd.f32 %v179_v7, %v178_v63  ;;  %v175_v18 = vrot.slane %v174_v10, 1  ;;  %v186_v19 = vadd.f32 %v185_v11, %v184_v3  ;;  %v74_v20 = vadd.f32 %v73_v12, %v72_v4  ;;  %v2401_v62 = vld [vmem:[%s3142_s1 + $0x188] sm:$0xff]   ;;  %v41_v63 = vld [vmem:[%s3141_s0 + $0x20] sm:$0xff] }
  0x16   :  { %2202 = vmatprep.subr.bf16.mxu1 %v2383_v21  ;;  %v85_v14 = vrot.slane %v84_v6, 1  ;;  %v91_v16 = vrot.slane %v90_v8, 1  ;;  %v80_v21 = vadd.f32 %v79_v13, %v78_v5  ;;  %v42_v0 = vld [vmem:[%s3141_s0 + $0x28] sm:$0xff]  ;;  %v57_v3 = vld [vmem:[%s3141_s0 + $0xa0] sm:$0xff]  ;;  %v93_v5 = vrot.slane %v41_v63, 4 }
  0x17   :  { %v58_v4 = vld [vmem:[%s3141_s0 + $0xa8] sm:$0xff]  ;;  %v105_v7 = vrot.slane %v43_v1, 4  ;;  %v111_v11 = vrot.slane %v44_v2, 4  ;;  %v189_v12 = vrot.slane %v57_v3, 4 }
  0x18   :  { %2181 = vmatpush3.bf16.msra.mxu0 %v2384_v22  ;;  %v86_v22 = vadd.f32 %v85_v14, %v84_v6  ;;  %v293_v29 = vcombine.low %v74_v20, %v80_v21  ;;  %v99_v6 = vrot.slane %v42_v0, 4  ;;  %v195_v13 = vrot.slane %v58_v4, 4  ;;  %v2404_v14 = vld [vmem:[%s3142_s1 + $0x110] sm:$0xff]  }
  0x19   :  { %2203 = vmatpush3.bf16.msra.mxu1 %v2385_v23  ;;  %2182 = vmatprep.subr.bf16.mxu0 %v2386_v24  ;;  %v181_v23 = vrot.slane %v180_v15, 1  ;;  %v92_v24 = vadd.f32 %v91_v16, %v90_v8  ;;  %v2403_v8 = vld [vmem:[%s3142_s1 + $0x1d0] sm:$0xff]   ;;  %v112_v20 = vadd.f32 %v111_v11, %v44_v2  ;;  %v190_v21 = vadd.f32 %v189_v12, %v57_v3 }
  0x1a   :  { %2204 = vmatprep.subr.bf16.mxu1 %v2387_v25  ;;  %v170_v25 = vadd.f32 %v169_v17, %v168_v9  ;;  %v59_v9 = vld [vmem:[%s3141_s0 + $0xb0] sm:$0xff]  ;;  %v100_v16 = vadd.f32 %v99_v6, %v42_v0  ;;  %v106_v17 = vadd.f32 %v105_v7, %v43_v1  ;;  %v2415_v7 = vld [vmem:[%s3142_s1 + $0x1e8] sm:$0xff]  }
  0x1c   :  { %2183 = vmatpush3.bf16.msra.mxu0 %v2388_v26  ;;  %v176_v26 = vadd.f32 %v175_v18, %v174_v10  ;;  %v60_v10 = vld [vmem:[%s3141_s0 + $0xb8] sm:$0xff]  ;;  %v201_v18 = vrot.slane %v59_v9, 4 }
  0x1d   :  { %2205 = vmatpush3.bf16.msra.mxu1 %v2389_v27  ;;  %2184 = vmatprep.subr.bf16.mxu0 %v2390_v28  ;;  %v187_v27 = vrot.slane %v186_v19, 1  ;;  %v182_v28 = vadd.f32 %v181_v23, %v180_v15  ;;  %v94_v15 = vadd.f32 %v93_v5, %v41_v63  ;;  %v207_v23 = vrot.slane %v60_v10, 4 }
  0x1e   :  { %2206 = vmatprep.subr.bf16.mxu1 %v2391_v30  ;;  %v297_v30 = vunpack.c.0.s8 %v296_v49  ;;  %v361_v33 = vcombine.low %v170_v25, %v176_v26  ;;  %v101_v26 = vrot.slane %v100_v16, 2 }
  0x1f   :  { %v95_v25 = vrot.slane %v94_v15, 2 }
  0x20   :  { %2185 = vmatpush3.bf16.msra.mxu0 %v2392_v31  ;;  %v188_v31 = vadd.f32 %v187_v27, %v186_v19  ;;  %v2709_v34 = vsub.s32 %v297_v30, %v2685_v36  ;;  %v2405_v19 = vld [vmem:[%s3142_s1 + $0x190] sm:$0xff]   ;;  %v107_v27 = vrot.slane %v106_v17, 2  ;;  %v113_v30 = vrot.slane %v112_v20, 2 }
  0x21   :  { %2207 = vmatpush3.bf16.msra.mxu1 %v2393_v32  ;;  %2214 = vmatprep.subr.bf16.mxu0 %v2394_v50  ;;  %v294_v32 = vcombine.low %v86_v22, %v92_v24  ;;  %v196_v22 = vadd.f32 %v195_v13, %v58_v4  ;;  %v2406_v24 = vld [vmem:[%s3142_s1 + $0x158] sm:$0xff]   ;;  %v2418_v13 = vld [vmem:[%s3142_s1 + $0x170] sm:$0xff]  }
  0x22   :  { %2236 = vmatprep.subr.bf16.mxu1 %v2395_v55  ;;  %v362_v35 = vcombine.low %v182_v28, %v188_v31  ;;  %v301_v37 = vrot.slane %v293_v29, %v2709_v34  ;;  %v369_v39 = vrot.slane %v361_v33, %v2709_v34  ;;  %v2397_v55 = vld [vmem:[%s3142_s1 + $0x180] sm:$0xff]   ;;  %v202_v28 = vadd.f32 %v201_v18, %v59_v9  ;;  %v2407_v29 = vld [vmem:[%s3142_s1 + $0x1d8] sm:$0xff]  }
  0x23   :  { %v308_v38 = vrot.slane %v294_v32, %v2709_v34  ;;  %v191_v31 = vrot.slane %v190_v21, 2  ;;  %v197_v32 = vrot.slane %v196_v22, 2  ;;  %v208_v33 = vadd.f32 %v207_v23, %v60_v10  ;;  %v2423_v23 = vld [vmem:[%s3142_s1 + $0x1f8] sm:$0xff]  }
  0x24   :  { %v376_v40 = vrot.slane %v362_v35, %v2709_v34  ;;  %v2408_v35 = vld [vmem:[%s3142_s1 + $0x118] sm:$0xff]  }
  0x25   :  { %v309_v41 = vcombine.low %v301_v37, %v308_v38  ;;  %v96_v37 = vadd.f32 %v95_v25, %v94_v15  ;;  %v102_v38 = vadd.f32 %v101_v26, %v100_v16  ;;  %v2419_v16 = vld [vmem:[%s3142_s1 + $0x1f0] sm:$0xff]  }
  0x26   :  { %v377_v42 = vcombine.low %v369_v39, %v376_v40  ;;  %v108_v39 = vadd.f32 %v107_v27, %v106_v17  ;;  %v203_v40 = vrot.slane %v202_v28, 2  ;;  %v2420_v17 = vld [vmem:[%s3142_s1 + $0x130] sm:$0xff]   ;;  %v2426_v27 = vld [vmem:[%s3142_s1 + $0x240] sm:$0xff]  }
  0x28   :  { %v433_v43 = vrot.slane %v377_v42, 7  ;;  %v114_v42 = vadd.f32 %v113_v30, %v112_v20  ;;  %v2422_v20 = vld [vmem:[%s3142_s1 + $0x178] sm:$0xff]  }
  0x2a   :  { %v435_v44 = vsel %vm434_vm0, %v433_v43, %v309_v41  ;;  %v2409_v41 = vld [vmem:[%s3142_s1 + $0x198] sm:$0xff]  }
  0x2b   :  { %v437_v36 = vsel %vm436_vm1, %v433_v43, %v435_v44  ;;  %v198_v44 = vadd.f32 %v197_v32, %v196_v22 }
  0x2c   :  { %v439_v45 = vsel %vm438_vm2, %v433_v43, %v437_v36  ;;  %v209_v36 = vrot.slane %v208_v33, 2 }
  0x2d   :  { %v441_v46 = vsel %vm440_vm3, %v433_v43, %v439_v45  ;;  %v192_v43 = vadd.f32 %v191_v31, %v190_v21  ;;  %v2410_v45 = vld [vmem:[%s3142_s1 + $0x160] sm:$0xff]   ;;  %v2421_v21 = vld [vmem:[%s3142_s1 + $0x1b0] sm:$0xff]  }
  0x2e   :  { %v493_v47 = vrot.slane %v441_v46, %v2709_v34  ;;  %v486_v48 = vcombine.high %v441_v46, %v441_v46  ;;  %v97_v46 = vrot.slane %v96_v37, 1  ;;  %v2427_v31 = vld [vmem:[%s3142_s1 + $0x2c0] sm:$0xff]  }
  0x30   :  { %v501_v49 = vcombine.high %v493_v47, %v493_v47  ;;  %v500_v50 = vrot.slane %v486_v48, %v2709_v34  ;;  %v570_v51 = vpack.c.bf16 %v493_v47, %v493_v47  ;;  %v103_v47 = vrot.slane %v102_v38, 1 }
  0x31   :  { %v109_v48 = vrot.slane %v108_v39, 1 }
  0x32   :  { %v571_v53 = vpack.c.bf16 %v501_v49, %v501_v49  ;;  %v502_v54 = vcombine.high %v500_v50, %v500_v50  ;;  %v572_v57 = vpack.c.bf16 %v500_v50, %v500_v50  ;;  %v204_v49 = vadd.f32 %v203_v40, %v202_v28  ;;  %v2411_v50 = vld [vmem:[%s3142_s1 + $0x1e0] sm:$0xff]   ;;  %v2425_v28 = vld [vmem:[%s3142_s1 + $0x1b8] sm:$0xff]  }
  0x34   :  { %1649 = vmatprep.mubr.bf16.mxu0 %v571_v53  ;;  %v573_v59 = vpack.c.bf16 %v502_v54, %v502_v54  ;;  %v199_v53 = vrot.slane %v198_v44, 1  ;;  %v210_v54 = vadd.f32 %v209_v36, %v208_v33  ;;  %v2431_v36 = vld [vmem:[%s3142_s1 + $0x2c8] sm:$0xff]  }
  0x35   :  { %1650 = vmatmul.mubr.bf16.vlgmr.msra.gmra.mrb[0].mxu0 %v570_v51  ;;  %v115_v51 = vrot.slane %v114_v42, 1 }
  0x36   :  { %1689 = vmatprep.mubr.bf16.mxu1 %v573_v59  ;;  %2215 = vmatpush3.bf16.msra.mxu0 %v2396_v52  ;;  %v193_v52 = vrot.slane %v192_v43, 1  ;;  %v205_v59 = vrot.slane %v204_v49, 1  ;;  %v200_v0 = vadd.f32 %v199_v53, %v198_v44  ;;  %v211_v1 = vrot.slane %v210_v54, 1  ;;  %v61_v53 = vld [vmem:[%s3141_s0 + $0xc0] sm:$0xff] }
  0x37   :  { %1690 = vmatmul.mubr.bf16.vlgmr.msra.gmra.mrb[0].mxu1 %v572_v57  ;;  %2216 = vmatprep.subr.bf16.mxu0 %v2398_v56  ;;  %v98_v56 = vadd.f32 %v97_v46, %v96_v37  ;;  %v104_v57 = vadd.f32 %v103_v47, %v102_v38  ;;  %v2432_v46 = vld [vmem:[%s3142_s1 + $0x208] sm:$0xff]   ;;  %v2434_v47 = vld [vmem:[%s3142_s1 + $0x250] sm:$0xff]  }
  0x38   :  { %2237 = vmatpush3.bf16.msra.mxu1 %v2397_v55  ;;  %v2412_v55 = vld [vmem:[%s3142_s1 + $0x120] sm:$0xff]   ;;  %v194_v63 = vadd.f32 %v193_v52, %v192_v43  ;;  %v206_v2 = vadd.f32 %v205_v59, %v204_v49  ;;  %v212_v4 = vadd.f32 %v211_v1, %v210_v54  ;;  %v2430_v43 = vld [vmem:[%s3142_s1 + $0x248] sm:$0xff]   ;;  %v48_v52 = vld [vmem:[%s3141_s0 + $0x58] sm:$0xff] }
  0x39   :  { %2238 = vmatprep.subr.bf16.mxu1 %v2399_v58  ;;  %v110_v58 = vadd.f32 %v109_v48, %v108_v39  ;;  %v310_v3 = vcombine.low %v98_v56, %v104_v57  ;;  %v2428_v39 = vld [vmem:[%s3142_s1 + $0x200] sm:$0xff]   ;;  %v2433_v48 = vld [vmem:[%s3142_s1 + $0x288] sm:$0xff]   ;;  %v63_v59 = vld [vmem:[%s3141_s0 + $0xd0] sm:$0xff] }
  0x3a   :  { %2217 = vmatpush3.bf16.msra.mxu0 %v2400_v60  ;;  %v2413_v60 = vld [vmem:[%s3142_s1 + $0x1a0] sm:$0xff]   ;;  %v378_v6 = vcombine.low %v194_v63, %v200_v0  ;;  %v379_v11 = vcombine.low %v206_v2, %v212_v4  ;;  %v62_v54 = vld [vmem:[%s3141_s0 + $0xc8] sm:$0xff]  ;;  %v2436_v0 = vld [vmem:[%s3142_s1 + $0x210] sm:$0xff]   ;;  %v225_v4 = vrot.slane %v63_v59, 4 }
  0x3b   :  { %2218 = vmatprep.subr.bf16.mxu0 %v2402_v61  ;;  %v2414_v61 = vld [vmem:[%s3142_s1 + $0x168] sm:$0xff]   ;;  %v318_v9 = vrot.slane %v310_v3, %v2709_v34  ;;  %v45_v49 = vld [vmem:[%s3141_s0 + $0x40] sm:$0xff]  ;;  %v219_v63 = vrot.slane %v62_v54, 4 }
  0x3c   :  { %2239 = vmatpush3.bf16.msra.mxu1 %v2401_v62  ;;  %v116_v62 = vadd.f32 %v115_v51, %v114_v42  ;;  %v386_v12 = vrot.slane %v378_v6, %v2709_v34  ;;  %v393_v15 = vrot.slane %v379_v11, %v2709_v34  ;;  %v2429_v42 = vld [vmem:[%s3142_s1 + $0x280] sm:$0xff]   ;;  %v47_v51 = vld [vmem:[%s3141_s0 + $0x50] sm:$0xff] }
  0x3d   :  { %2240 = vmatprep.subr.bf16.mxu1 %v2403_v8  ;;  %v2416_v8 = vld [vmem:[%s3142_s1 + $0x128] sm:$0xff]   ;;  %v129_v57 = vrot.slane %v47_v51, 4 }
  0x3e   :  { %2219 = vmatpush3.bf16.msra.mxu0 %v2404_v14  ;;  %v311_v5 = vcombine.low %v110_v58, %v116_v62  ;;  %v2417_v14 = vld [vmem:[%s3142_s1 + $0x1a8] sm:$0xff]   ;;  %v2435_v58 = vld [vmem:[%s3142_s1 + $0x2d0] sm:$0xff]   ;;  %v213_v62 = vrot.slane %v61_v53, 4 }
  0x3f   :  { %2220 = vmatprep.subr.bf16.mxu0 %v2406_v24  ;;  %v2424_v24 = vld [vmem:[%s3142_s1 + $0x138] sm:$0xff]   ;;  %v130_v3 = vadd.f32 %v129_v57, %v47_v51  ;;  %v2447_v57 = vld [vmem:[%s3142_s1 + $0x2e8] sm:$0xff]  }
  0x40   :  { %2241 = vmatpush3.bf16.msra.mxu1 %v2405_v19  ;;  %v325_v10 = vrot.slane %v311_v5, %v2709_v34  ;;  %v394_v19 = vcombine.low %v386_v12, %v393_v15  ;;  %v2437_v5 = vld [vmem:[%s3142_s1 + $0x290] sm:$0xff]   ;;  %v2439_v15 = vld [vmem:[%s3142_s1 + $0x2d8] sm:$0xff]  }
  0x41   :  { %2242 = vmatprep.subr.bf16.mxu1 %v2407_v29 }
  0x42   :  { %2221 = vmatpush3.bf16.msra.mxu0 %v2408_v35  ;;  %v326_v18 = vcombine.low %v318_v9, %v325_v10  ;;  %v444_v22 = vrot.slane %v394_v19, 7  ;;  %v2438_v10 = vld [vmem:[%s3142_s1 + $0x258] sm:$0xff]  }
  0x43   :  { %2222 = vmatprep.subr.bf16.mxu0 %v2410_v45 }
  0x44   :  { %2243 = vmatpush3.bf16.msra.mxu1 %v2409_v41  ;;  %v445_v25 = vsel %vm434_vm0, %v444_v22, %v326_v18 }
  0x45   :  { %2244 = vmatprep.subr.bf16.mxu1 %v2411_v50  ;;  %v446_v26 = vsel %vm436_vm1, %v444_v22, %v445_v25  ;;  %v46_v50 = vld [vmem:[%s3141_s0 + $0x48] sm:$0xff]  ;;  %v2441_v25 = vld [vmem:[%s3142_s1 + $0x298] sm:$0xff]  }
  0x46   :  { %2223 = vmatpush3.bf16.msra.mxu0 %v2412_v55  ;;  %v447_v29 = vsel %vm438_vm2, %v444_v22, %v446_v26  ;;  %v117_v55 = vrot.slane %v45_v49, 4  ;;  %v123_v56 = vrot.slane %v46_v50, 4 }
  0x47   :  { %2224 = vmatprep.subr.bf16.mxu0 %v2414_v61  ;;  %v448_v30 = vsel %vm440_vm3, %v444_v22, %v447_v29  ;;  %v135_v61 = vrot.slane %v48_v52, 4 }
  0x48   :  { %2245 = vmatpush3.bf16.msra.mxu1 %v2413_v60  ;;  %v510_v32 = vrot.slane %v448_v30, %v2709_v34  ;;  %v503_v33 = vcombine.high %v448_v30, %v448_v30  ;;  %v64_v60 = vld [vmem:[%s3141_s0 + $0xd8] sm:$0xff]  ;;  %v118_v1 = vadd.f32 %v117_v55, %v45_v49  ;;  %v124_v2 = vadd.f32 %v123_v56, %v46_v50  ;;  %v2442_v30 = vld [vmem:[%s3142_s1 + $0x260] sm:$0xff]  }
  0x49   :  { %2246 = vmatprep.subr.bf16.mxu1 %v2415_v7  ;;  %v136_v6 = vadd.f32 %v135_v61, %v48_v52  ;;  %v214_v7 = vadd.f32 %v213_v62, %v61_v53  ;;  %v231_v9 = vrot.slane %v64_v60, 4 }
  0x4a   :  { %2225 = vmatpush3.bf16.msra.mxu0 %v2416_v8  ;;  %v518_v35 = vcombine.high %v510_v32, %v510_v32  ;;  %v517_v37 = vrot.slane %v503_v33, %v2709_v34  ;;  %v574_v38 = vpack.c.bf16 %v510_v32, %v510_v32  ;;  %v220_v8 = vadd.f32 %v219_v63, %v62_v54  ;;  %v2450_v63 = vld [vmem:[%s3142_s1 + $0x270] sm:$0xff]  }
  0x4b   :  { %2226 = vmatprep.subr.bf16.mxu0 %v2418_v13  ;;  %v119_v11 = vrot.slane %v118_v1, 2  ;;  %v125_v12 = vrot.slane %v124_v2, 2  ;;  %v131_v13 = vrot.slane %v130_v3, 2  ;;  %v232_v19 = vadd.f32 %v231_v9, %v64_v60  ;;  %v2455_v9 = vld [vmem:[%s3142_s1 + $0x2f8] sm:$0xff]  }
  0x4c   :  { %2247 = vmatpush3.bf16.msra.mxu1 %v2417_v14  ;;  %v575_v40 = vpack.c.bf16 %v518_v35, %v518_v35  ;;  %v519_v41 = vcombine.high %v517_v37, %v517_v37  ;;  %v576_v44 = vpack.c.bf16 %v517_v37, %v517_v37  ;;  %v226_v14 = vadd.f32 %v225_v4, %v63_v59  ;;  %v2443_v37 = vld [vmem:[%s3142_s1 + $0x2e0] sm:$0xff]  }
  0x4d   :  { %2248 = vmatprep.subr.bf16.mxu1 %v2419_v16  ;;  %v137_v16 = vrot.slane %v136_v6, 2  ;;  %v221_v18 = vrot.slane %v220_v8, 2  ;;  %v126_v22 = vadd.f32 %v125_v12, %v124_v2  ;;  %v233_v29 = vrot.slane %v232_v19, 2  ;;  %v2451_v2 = vld [vmem:[%s3142_s1 + $0x2f0] sm:$0xff]  }
  0x4e   :  { %2227 = vmatpush3.bf16.msra.mxu0 %v2420_v17  ;;  %1729 = vmatprep.mubr.bf16.mxu0 %v575_v40  ;;  %v577_v45 = vpack.c.bf16 %v519_v41, %v519_v41  ;;  %v215_v17 = vrot.slane %v214_v7, 2 }
  0x4f   :  { %2228 = vmatprep.subr.bf16.mxu0 %v2422_v20  ;;  %v2440_v20 = vld [vmem:[%s3142_s1 + $0x218] sm:$0xff]   ;;  %v138_v26 = vadd.f32 %v137_v16, %v136_v6  ;;  %v127_v32 = vrot.slane %v126_v22, 1  ;;  %v234_v41 = vadd.f32 %v233_v29, %v232_v19  ;;  %v2463_v29 = vld [vmem:[%s3142_s1 + $0x3c8] sm:$0xff]  }
  0x50   :  { %2249 = vmatpush3.bf16.msra.mxu1 %v2421_v21  ;;  %1769 = vmatprep.mubr.bf16.mxu1 %v577_v45  ;;  %v120_v21 = vadd.f32 %v119_v11, %v118_v1  ;;  %v2454_v6 = vld [vmem:[%s3142_s1 + $0x278] sm:$0xff]  }
  0x51   :  { %2250 = vmatprep.subr.bf16.mxu1 %v2423_v23  ;;  %v132_v23 = vadd.f32 %v131_v13, %v130_v3  ;;  %v235_v51 = vrot.slane %v234_v41, 1  ;;  %v2452_v3 = vld [vmem:[%s3142_s1 + $0x230] sm:$0xff]   ;;  %v2458_v13 = vld [vmem:[%s3142_s1 + $0x340] sm:$0xff]  }
  0x52   :  { %2229 = vmatpush3.bf16.msra.mxu0 %v2424_v24  ;;  %v227_v24 = vrot.slane %v226_v14, 2 }
  0x53   :  { %2258 = vmatprep.subr.bf16.mxu0 %v2426_v27  ;;  %v216_v27 = vadd.f32 %v215_v17, %v214_v7  ;;  %v133_v33 = vrot.slane %v132_v23, 1  ;;  %v236_v54 = vadd.f32 %v235_v51, %v234_v41  ;;  %v2453_v7 = vld [vmem:[%s3142_s1 + $0x2b0] sm:$0xff]   ;;  %v2459_v17 = vld [vmem:[%s3142_s1 + $0x3c0] sm:$0xff]  }
  0x54   :  { %2251 = vmatpush3.bf16.msra.mxu1 %v2425_v28  ;;  %v222_v28 = vadd.f32 %v221_v18, %v220_v8  ;;  %v228_v35 = vadd.f32 %v227_v24, %v226_v14  ;;  %v2457_v14 = vld [vmem:[%s3142_s1 + $0x2b8] sm:$0xff]  }
  0x55   :  { %2280 = vmatprep.subr.bf16.mxu1 %v2427_v31  ;;  %1730 = vmatmul.mubr.bf16.vlgmr.msra.gmra.mrb[4].mxu0 %v574_v38  ;;  %v121_v31 = vrot.slane %v120_v21, 1  ;;  %v139_v38 = vrot.slane %v138_v26, 1 }
  0x56   :  { %2259 = vmatpush3.bf16.msra.mxu0 %v2428_v39  ;;  %v217_v39 = vrot.slane %v216_v27, 1  ;;  %v223_v40 = vrot.slane %v222_v28, 1  ;;  %v229_v45 = vrot.slane %v228_v35, 1 }
  0x57   :  { %1770 = vmatmul.mubr.bf16.vlgmr.msra.gmra.mrb[4].mxu1 %v576_v44  ;;  %2260 = vmatprep.subr.bf16.mxu0 %v2430_v43  ;;  %v122_v43 = vadd.f32 %v121_v31, %v120_v21  ;;  %v128_v44 = vadd.f32 %v127_v32, %v126_v22  ;;  %v2464_v31 = vld [vmem:[%s3142_s1 + $0x308] sm:$0xff]   ;;  %v2466_v32 = vld [vmem:[%s3142_s1 + $0x350] sm:$0xff]  }
  0x58   :  { %2281 = vmatpush3.bf16.msra.mxu1 %v2429_v42  ;;  %v2444_v42 = vld [vmem:[%s3142_s1 + $0x220] sm:$0xff]   ;;  %v218_v49 = vadd.f32 %v217_v39, %v216_v27  ;;  %v224_v50 = vadd.f32 %v223_v40, %v222_v28  ;;  %v230_v52 = vadd.f32 %v229_v45, %v228_v35  ;;  %v2462_v27 = vld [vmem:[%s3142_s1 + $0x348] sm:$0xff]   ;;  %v68_v45 = vld [vmem:[%s3141_s0 + $0xf8] sm:$0xff] }
  0x59   :  { %2282 = vmatprep.subr.bf16.mxu1 %v2431_v36  ;;  %v134_v36 = vadd.f32 %v133_v33, %v132_v23  ;;  %v327_v53 = vcombine.low %v122_v43, %v128_v44  ;;  %v2460_v23 = vld [vmem:[%s3142_s1 + $0x300] sm:$0xff]   ;;  %v50_v35 = vld [vmem:[%s3141_s0 + $0x68] sm:$0xff] }
  0x5a   :  { %2261 = vmatpush3.bf16.msra.mxu0 %v2432_v46  ;;  %v2445_v46 = vld [vmem:[%s3142_s1 + $0x2a0] sm:$0xff]   ;;  %v395_v56 = vcombine.low %v218_v49, %v224_v50  ;;  %v396_v61 = vcombine.low %v230_v52, %v236_v54  ;;  %v66_v40 = vld [vmem:[%s3141_s0 + $0xe8] sm:$0xff]  ;;  %v2467_v49 = vld [vmem:[%s3142_s1 + $0x3d0] sm:$0xff]  }
  0x5b   :  { %2262 = vmatprep.subr.bf16.mxu0 %v2434_v47  ;;  %v2446_v47 = vld [vmem:[%s3142_s1 + $0x268] sm:$0xff]   ;;  %v335_v59 = vrot.slane %v327_v53, %v2709_v34  ;;  %v49_v33 = vld [vmem:[%s3141_s0 + $0x60] sm:$0xff]  ;;  %v2468_v54 = vld [vmem:[%s3142_s1 + $0x310] sm:$0xff]  }
  0x5c   :  { %2283 = vmatpush3.bf16.msra.mxu1 %v2433_v48  ;;  %v140_v48 = vadd.f32 %v139_v38, %v138_v26  ;;  %v403_v62 = vrot.slane %v395_v56, %v2709_v34  ;;  %v410_v1 = vrot.slane %v396_v61, %v2709_v34  ;;  %v2461_v26 = vld [vmem:[%s3142_s1 + $0x380] sm:$0xff]   ;;  %v52_v38 = vld [vmem:[%s3141_s0 + $0x78] sm:$0xff]  ;;  %v141_v41 = vrot.slane %v49_v33, 4  ;;  %v2465_v44 = vld [vmem:[%s3142_s1 + $0x388] sm:$0xff]  }
  0x5d   :  { %2284 = vmatprep.subr.bf16.mxu1 %v2435_v58  ;;  %v2448_v58 = vld [vmem:[%s3142_s1 + $0x228] sm:$0xff]   ;;  %v65_v39 = vld [vmem:[%s3141_s0 + $0xe0] sm:$0xff] }
  0x5e   :  { %2263 = vmatpush3.bf16.msra.mxu0 %v2436_v0  ;;  %v328_v55 = vcombine.low %v134_v36, %v140_v48  ;;  %v2449_v0 = vld [vmem:[%s3142_s1 + $0x2a8] sm:$0xff]   ;;  %v67_v36 = vld [vmem:[%s3141_s0 + $0xf0] sm:$0xff]  ;;  %v243_v48 = vrot.slane %v66_v40, 4  ;;  %v142_v50 = vadd.f32 %v141_v41, %v49_v33 }
  0x5f   :  { %2264 = vmatprep.subr.bf16.mxu0 %v2438_v10  ;;  %v2456_v10 = vld [vmem:[%s3142_s1 + $0x238] sm:$0xff]   ;;  %v249_v53 = vrot.slane %v67_v36, 4 }
  0x60   :  { %2285 = vmatpush3.bf16.msra.mxu1 %v2437_v5  ;;  %v342_v60 = vrot.slane %v328_v55, %v2709_v34  ;;  %v411_v5 = vcombine.low %v403_v62, %v410_v1 }
  0x61   :  { %2286 = vmatprep.subr.bf16.mxu1 %v2439_v15 }
  0x62   :  { %2265 = vmatpush3.bf16.msra.mxu0 %v2440_v20  ;;  %v343_v4 = vcombine.low %v335_v59, %v342_v60  ;;  %v451_v8 = vrot.slane %v411_v5, 7  ;;  %v2470_v59 = vld [vmem:[%s3142_s1 + $0x358] sm:$0xff]   ;;  %v143_v60 = vrot.slane %v142_v50, 2 }
  0x63   :  { %2266 = vmatprep.subr.bf16.mxu0 %v2442_v30 }
  0x64   :  { %2287 = vmatpush3.bf16.msra.mxu1 %v2441_v25  ;;  %v452_v11 = vsel %vm434_vm0, %v451_v8, %v343_v4 }
  0x65   :  { %2288 = vmatprep.subr.bf16.mxu1 %v2443_v37  ;;  %v453_v12 = vsel %vm436_vm1, %v451_v8, %v452_v11  ;;  %v51_v37 = vld [vmem:[%s3141_s0 + $0x70] sm:$0xff] }
  0x66   :  { %2267 = vmatpush3.bf16.msra.mxu0 %v2444_v42  ;;  %v454_v15 = vsel %vm438_vm2, %v451_v8, %v453_v12  ;;  %v147_v42 = vrot.slane %v50_v35, 4  ;;  %v153_v43 = vrot.slane %v51_v37, 4 }
  0x67   :  { %2268 = vmatprep.subr.bf16.mxu0 %v2446_v47  ;;  %v455_v16 = vsel %vm440_vm3, %v451_v8, %v454_v15  ;;  %v237_v47 = vrot.slane %v65_v39, 4 }
  0x68   :  { %2289 = vmatpush3.bf16.msra.mxu1 %v2445_v46  ;;  %v527_v18 = vrot.slane %v455_v16, %v2709_v34  ;;  %v520_v19 = vcombine.high %v455_v16, %v455_v16  ;;  %v159_v46 = vrot.slane %v52_v38, 4  ;;  %v148_v51 = vadd.f32 %v147_v42, %v50_v35 }
  0x69   :  { %2290 = vmatprep.subr.bf16.mxu1 %v2447_v57  ;;  %v154_v52 = vadd.f32 %v153_v43, %v51_v37  ;;  %v238_v56 = vadd.f32 %v237_v47, %v65_v39  ;;  %v244_v57 = vadd.f32 %v243_v48, %v66_v40 }
  0x6a   :  { %2269 = vmatpush3.bf16.msra.mxu0 %v2448_v58  ;;  %v535_v20 = vcombine.high %v527_v18, %v527_v18  ;;  %v534_v21 = vrot.slane %v520_v19, %v2709_v34  ;;  %v578_v22 = vpack.c.bf16 %v527_v18, %v527_v18  ;;  %v160_v55 = vadd.f32 %v159_v46, %v52_v38 }
  0x6b   :  { %2270 = vmatprep.subr.bf16.mxu0 %v2450_v63  ;;  %v255_v58 = vrot.slane %v68_v45, 4  ;;  %v149_v61 = vrot.slane %v148_v51, 2  ;;  %v155_v62 = vrot.slane %v154_v52, 2  ;;  %v250_v63 = vadd.f32 %v249_v53, %v67_v36 }
  0x6c   :  { %2291 = vmatpush3.bf16.msra.mxu1 %v2449_v0  ;;  %v579_v24 = vpack.c.bf16 %v535_v20, %v535_v20  ;;  %v536_v25 = vcombine.high %v534_v21, %v534_v21  ;;  %v580_v28 = vpack.c.bf16 %v534_v21, %v534_v21 }
  0x6d   :  { %2292 = vmatprep.subr.bf16.mxu1 %v2451_v2 }
  0x6e   :  { %2271 = vmatpush3.bf16.msra.mxu0 %v2452_v3  ;;  %1809 = vmatprep.mubr.bf16.mxu0 %v579_v24  ;;  %v581_v30 = vpack.c.bf16 %v536_v25, %v536_v25 }
  0x6f   :  { %2272 = vmatprep.subr.bf16.mxu0 %v2454_v6 }
  0x70   :  { %2293 = vmatpush3.bf16.msra.mxu1 %v2453_v7  ;;  %1849 = vmatprep.mubr.bf16.mxu1 %v581_v30 }
  0x71   :  { %2294 = vmatprep.subr.bf16.mxu1 %v2455_v9 }
  0x72   :  { %2273 = vmatpush3.bf16.msra.mxu0 %v2456_v10 }
  0x73   :  { %2302 = vmatprep.subr.bf16.mxu0 %v2458_v13 }
  0x74   :  { %2295 = vmatpush3.bf16.msra.mxu1 %v2457_v14 }
  0x75   :  { %2324 = vmatprep.subr.bf16.mxu1 %v2459_v17  ;;  %1810 = vmatmul.mubr.bf16.vlgmr.msra.gmra.mrb[8].mxu0 %v578_v22 }
  0x76   :  { %2303 = vmatpush3.bf16.msra.mxu0 %v2460_v23 }
  0x77   :  { %1850 = vmatmul.mubr.bf16.vlgmr.msra.gmra.mrb[8].mxu1 %v580_v28  ;;  %2304 = vmatprep.subr.bf16.mxu0 %v2462_v27 }
  0x78   :  { %2325 = vmatpush3.bf16.msra.mxu1 %v2461_v26 }
  0x79   :  { %2326 = vmatprep.subr.bf16.mxu1 %v2463_v29 }
  0x7a   :  { %2305 = vmatpush3.bf16.msra.mxu0 %v2464_v31 }
  0x7b   :  { %2306 = vmatprep.subr.bf16.mxu0 %v2466_v32 }
  0x7c   :  { %13 = vsyncpa [#allocation6], 0  ;;  %2327 = vmatpush3.bf16.msra.mxu1 %v2465_v44  ;;  %v2469_v0 = vld [vmem:[%s3142_s1 + $0x390] sm:$0xff]   ;;  %v161_v1 = vrot.slane %v160_v55, 2  ;;  %v239_v2 = vrot.slane %v238_v56, 2  ;;  %v245_v3 = vrot.slane %v244_v57, 2  ;;  %v256_v4 = vadd.f32 %v255_v58, %v68_v45 }
  0x7d   :  { %2328 = vmatprep.subr.bf16.mxu1 %v2467_v49  ;;  %v2471_v5 = vld [vmem:[%s3142_s1 + $0x3d8] sm:$0xff]   ;;  %v144_v6 = vadd.f32 %v143_v60, %v142_v50  ;;  %v150_v7 = vadd.f32 %v149_v61, %v148_v51  ;;  %v156_v8 = vadd.f32 %v155_v62, %v154_v52  ;;  %v251_v9 = vrot.slane %v250_v63, 2  ;;  %v2474_v15 = vld [vmem:[%s3142_s1 + $0x360] sm:$0xff]   ;;  %v2478_v37 = vld [vmem:[%s3142_s1 + $0x368] sm:$0xff]  }
  0x7e   :  { %2307 = vmatpush3.bf16.msra.mxu0 %v2468_v54  ;;  %v2472_v10 = vld [vmem:[%s3142_s1 + $0x318] sm:$0xff]   ;;  %v162_v11 = vadd.f32 %v161_v1, %v160_v55  ;;  %v240_v12 = vadd.f32 %v239_v2, %v238_v56  ;;  %v246_v13 = vadd.f32 %v245_v3, %v244_v57  ;;  %v257_v14 = vrot.slane %v256_v4, 2  ;;  %v2475_v25 = vld [vmem:[%s3142_s1 + $0x3e0] sm:$0xff]   ;;  %v2479_v44 = vld [vmem:[%s3142_s1 + $0x3e8] sm:$0xff]  }
  0x7f   :  { %2308 = vmatprep.subr.bf16.mxu0 %v2470_v59  ;;  %v145_v16 = vrot.slane %v144_v6, 1  ;;  %v151_v17 = vrot.slane %v150_v7, 1  ;;  %v157_v18 = vrot.slane %v156_v8, 1  ;;  %v252_v19 = vadd.f32 %v251_v9, %v250_v63  ;;  %v2473_v20 = vld [vmem:[%s3142_s1 + $0x398] sm:$0xff]   ;;  %v2476_v30 = vld [vmem:[%s3142_s1 + $0x320] sm:$0xff]   ;;  %v2480_v36 = vld [vmem:[%s3142_s1 + $0x328] sm:$0xff]  }
  0x80   :  { %2329 = vmatpush3.bf16.msra.mxu1 %v2469_v0  ;;  %v163_v21 = vrot.slane %v162_v11, 1  ;;  %v241_v22 = vrot.slane %v240_v12, 1  ;;  %v247_v23 = vrot.slane %v246_v13, 1  ;;  %v258_v24 = vadd.f32 %v257_v14, %v256_v4  ;;  %v2477_v40 = vld [vmem:[%s3142_s1 + $0x3a0] sm:$0xff]   ;;  %v2482_v49 = vld [vmem:[%s3142_s1 + $0x370] sm:$0xff]   ;;  %v2481_v50 = vld [vmem:[%s3142_s1 + $0x3a8] sm:$0xff]  }
  0x81   :  { %2330 = vmatprep.subr.bf16.mxu1 %v2471_v5  ;;  %v146_v26 = vadd.f32 %v145_v16, %v144_v6  ;;  %v152_v27 = vadd.f32 %v151_v17, %v150_v7  ;;  %v158_v28 = vadd.f32 %v157_v18, %v156_v8  ;;  %v253_v29 = vrot.slane %v252_v19, 1  ;;  %v2483_v52 = vld [vmem:[%s3142_s1 + $0x3f0] sm:$0xff]   ;;  %v2486_v56 = vld [vmem:[%s3142_s1 + $0x378] sm:$0xff]   ;;  %v2037_v14 = vld [vmem:[%s3143_s2] ss:$0 sm:$0xff]  ;;  %s2543_s2 = smov [#allocation3]  }
  0x82   :  { %2309 = vmatpush3.bf16.msra.mxu0 %v2472_v10  ;;  %v164_v31 = vadd.f32 %v163_v21, %v162_v11  ;;  %v242_v32 = vadd.f32 %v241_v22, %v240_v12  ;;  %v248_v33 = vadd.f32 %v247_v23, %v246_v13  ;;  %v259_v35 = vrot.slane %v258_v24, 1  ;;  %v2484_v53 = vld [vmem:[%s3142_s1 + $0x330] sm:$0xff]   ;;  %v2487_v59 = vld [vmem:[%s3142_s1 + $0x3f8] sm:$0xff]   ;;  %v2490_v11 = vld [vmem:[%s3144_s3] sm:$0xff]  }
  0x83   :  { %2310 = vmatprep.subr.bf16.mxu0 %v2474_v15  ;;  %v254_v38 = vadd.f32 %v253_v29, %v252_v19  ;;  %v344_v39 = vcombine.low %v146_v26, %v152_v27  ;;  %v2485_v57 = vld [vmem:[%s3142_s1 + $0x3b0] sm:$0xff]   ;;  %v2488_v60 = vld [vmem:[%s3142_s1 + $0x338] sm:$0xff]   ;;  %v2541_v12 = vmov 0.0   ;;  %vm2542_vm4 = vmmov 0  }
  0x84   :  { %2331 = vmatpush3.bf16.msra.mxu1 %v2473_v20  ;;  %v260_v41 = vadd.f32 %v259_v35, %v258_v24  ;;  %v345_v42 = vcombine.low %v158_v28, %v164_v31  ;;  %v412_v43 = vcombine.low %v242_v32, %v248_v33  ;;  %v2489_v63 = vld [vmem:[%s3142_s1 + $0x3b8] sm:$0xff]   ;;  %vm1937_vm5 = vcmask 254976  }
  0x85   :  { %2332 = vmatprep.subr.bf16.mxu1 %v2475_v25  ;;  %v352_v45 = vrot.slane %v344_v39, %v2709_v34  ;;  %vm1963_vm6 = vcmask 261120  }
  0x86   :  { %2311 = vmatpush3.bf16.msra.mxu0 %v2476_v30  ;;  %v359_v46 = vrot.slane %v345_v42, %v2709_v34  ;;  %v413_v47 = vcombine.low %v254_v38, %v260_v41  ;;  %v420_v48 = vrot.slane %v412_v43, %v2709_v34 }
  0x87   :  { %2312 = vmatprep.subr.bf16.mxu0 %v2478_v37 }
  0x88   :  { %2333 = vmatpush3.bf16.msra.mxu1 %v2477_v40  ;;  %v427_v51 = vrot.slane %v413_v47, %v2709_v34  ;;  %v360_v54 = vcombine.low %v352_v45, %v359_v46 }
  0x89   :  { %2334 = vmatprep.subr.bf16.mxu1 %v2479_v44 }
  0x8a   :  { %2313 = vmatpush3.bf16.msra.mxu0 %v2480_v36  ;;  %v428_v55 = vcombine.low %v420_v48, %v427_v51 }
  0x8b   :  { %2314 = vmatprep.subr.bf16.mxu0 %v2482_v49 }
  0x8c   :  { %2335 = vmatpush3.bf16.msra.mxu1 %v2481_v50  ;;  %v458_v58 = vrot.slane %v428_v55, 7 }
  0x8d   :  { %2336 = vmatprep.subr.bf16.mxu1 %v2483_v52 }
  0x8e   :  { %2315 = vmatpush3.bf16.msra.mxu0 %v2484_v53  ;;  %v459_v61 = vsel %vm434_vm0, %v458_v58, %v360_v54 }
  0x8f   :  { %2316 = vmatprep.subr.bf16.mxu0 %v2486_v56  ;;  %v460_v62 = vsel %vm436_vm1, %v458_v58, %v459_v61 }
  0x90   :  { %2337 = vmatpush3.bf16.msra.mxu1 %v2485_v57  ;;  %v461_v0 = vsel %vm438_vm2, %v458_v58, %v460_v62 }
  0x91   :  { %2338 = vmatprep.subr.bf16.mxu1 %v2487_v59  ;;  %v462_v1 = vsel %vm440_vm3, %v458_v58, %v461_v0 }
  0x92   :  { %2317 = vmatpush3.bf16.msra.mxu0 %v2488_v60  ;;  %v544_v2 = vrot.slane %v462_v1, %v2709_v34  ;;  %v537_v3 = vcombine.high %v462_v1, %v462_v1 }
  0x93   :  { %2349 = vmatprep.subr.bf16.mxu0 %v2541_v12 }
  0x94   :  { %2339 = vmatpush3.bf16.msra.mxu1 %v2489_v63  ;;  %v552_v4 = vcombine.high %v544_v2, %v544_v2  ;;  %v551_v5 = vrot.slane %v537_v3, %v2709_v34  ;;  %v582_v6 = vpack.c.bf16 %v544_v2, %v544_v2  ;;  %v2491_v34 = vld [vmem:[%s3144_s3 + $0x8] sm:$0xff]   ;;  %s2015_s3 = sshll.u32 %s2543_s2, 4  ;;  %s2016_s3 = int_to_ptr.vmem [resolvable:$true] %s2015_s3 }
  0x95   :  { %s2492_s8 = scalar_lea.vmem %s2016_s3, 32  ;;  %p2497_p1 = scmp.lt.s32.totalorder %s2016_s3, %s2016_s3 }
  0x96   :  { %v583_v7 = vpack.c.bf16 %v552_v4, %v552_v4  ;;  %v553_v8 = vcombine.high %v551_v5, %v551_v5  ;;  %v584_v9 = vpack.c.bf16 %v551_v5, %v551_v5  ;;  %p2493_p0 = scmp.ne.s32.totalorder %s2016_s3, %s2492_s8  ;;  %p2498_p2 = scmp.lt.s32.totalorder %s2492_s8, %s2492_s8 }
  0x98   :  { %1889 = vmatprep.mubr.bf16.mxu0 %v583_v7  ;;  %v585_v10 = vpack.c.bf16 %v553_v8, %v553_v8  ;;  %p2499_p3 = por %p2498_p2, %p2497_p1 }
  0x99   :  { %1890 = vmatmul.mubr.bf16.vlgmr.msra.gmra.mrb[12].mxu0 %v582_v6 }
  0x9a   :  { %1929 = vmatprep.mubr.bf16.mxu1 %v585_v10  ;;  %2350 = vmatpush3.bf16.msra.mxu0 %v2490_v11  ;;  %p2500_p4 = pnand %p2499_p3, %p2493_p0 }
  0x9b   :  { %1930 = vmatmul.mubr.bf16.vlgmr.msra.gmra.mrb[12].mxu1 %v584_v9  ;;  %2351 = vmatprep.subr.bf16.mxu0 %v2541_v12 }
  0x9c   :  { %2353 = vmatprep.mubr.msk.bf16.mxu0 %vm2542_vm4, %v2541_v12 }
  0x9e   :  { %2352 = vmatpush3.bf16.msra.mxu0 %v2491_v34 }
 0x108   :  { %v2186_v13 = vpop.f32.mrb[0].mxu0 }
 0x109   :  { %v2187_v15 = vpop.f32.mrb[1].mxu0 }
 0x10a   :  { %v2208_v16 = vpop.f32.mrb[0].mxu1  ;;  %v2188_v17 = vadd.f32 %v2187_v15, %v2186_v13  ;;  %v2189_v18 = vpop.f32.mrb[2].mxu0 }
 0x10b   :  { %v2209_v19 = vpop.f32.mrb[1].mxu1  ;;  %v2190_v20 = vpop.f32.mrb[3].mxu0 }
 0x10c   :  { %v1652_v21 = vadd.f32 %v2188_v17, %v2037_v14  ;;  %v2210_v22 = vadd.f32 %v2209_v19, %v2208_v16  ;;  %v2211_v23 = vpop.f32.mrb[2].mxu1 }
 0x10d   :  { %v2212_v24 = vpop.f32.mrb[3].mxu1 }
 0x10e   :  { %v1692_v25 = vadd.f32 %v2210_v22, %v1652_v21 }
 0x128   :  { %v2230_v26 = vpop.f32.mrb[4].mxu0 }
 0x129   :  { %v2231_v27 = vpop.f32.mrb[5].mxu0 }
 0x12a   :  { %v2252_v28 = vpop.f32.mrb[4].mxu1  ;;  %v2232_v29 = vadd.f32 %v2231_v27, %v2230_v26  ;;  %v2233_v30 = vpop.f32.mrb[6].mxu0 }
 0x12b   :  { %v2253_v31 = vpop.f32.mrb[5].mxu1  ;;  %v2234_v32 = vpop.f32.mrb[7].mxu0 }
 0x12c   :  { %v1732_v33 = vadd.f32 %v2232_v29, %v1692_v25  ;;  %v2254_v35 = vadd.f32 %v2253_v31, %v2252_v28  ;;  %v2255_v37 = vpop.f32.mrb[6].mxu1 }
 0x12d   :  { %v2256_v38 = vpop.f32.mrb[7].mxu1 }
 0x12e   :  { %v1772_v39 = vadd.f32 %v2254_v35, %v1732_v33 }
 0x148   :  { %v2274_v40 = vpop.f32.mrb[8].mxu0 }
 0x149   :  { %v2275_v41 = vpop.f32.mrb[9].mxu0 }
 0x14a   :  { %v2296_v42 = vpop.f32.mrb[8].mxu1  ;;  %v2276_v43 = vadd.f32 %v2275_v41, %v2274_v40  ;;  %v2277_v44 = vpop.f32.mrb[10].mxu0 }
 0x14b   :  { %v2297_v36 = vpop.f32.mrb[9].mxu1  ;;  %v2278_v45 = vpop.f32.mrb[11].mxu0 }
 0x14c   :  { %v1812_v46 = vadd.f32 %v2276_v43, %v1772_v39  ;;  %v2298_v47 = vadd.f32 %v2297_v36, %v2296_v42  ;;  %v2299_v48 = vpop.f32.mrb[10].mxu1 }
 0x14d   :  { %v2300_v49 = vpop.f32.mrb[11].mxu1 }
 0x14e   :  { %v1852_v50 = vadd.f32 %v2298_v47, %v1812_v46 }
 0x16c   :  { %v2318_v51 = vpop.f32.mrb[12].mxu0 }
 0x16d   :  { %v2319_v52 = vpop.f32.mrb[13].mxu0 }
 0x16e   :  { %v2340_v53 = vpop.f32.mrb[12].mxu1  ;;  %v2320_v54 = vadd.f32 %v2319_v52, %v2318_v51  ;;  %v2321_v55 = vpop.f32.mrb[14].mxu0 }
 0x16f   :  { %v2341_v56 = vpop.f32.mrb[13].mxu1  ;;  %v2322_v57 = vpop.f32.mrb[15].mxu0 }
 0x170   :  { %v1892_v58 = vadd.f32 %v2320_v54, %v1852_v50  ;;  %v2342_v59 = vadd.f32 %v2341_v56, %v2340_v53  ;;  %v2343_v60 = vpop.f32.mrb[14].mxu1 }
 0x171   :  { %v2344_v61 = vpop.f32.mrb[15].mxu1 }
 0x172   :  { %v1932_v62 = vadd.f32 %v2342_v59, %v1892_v58 }
 0x174   :  { %v1939_v63 = vpack.c.bf16 %v1932_v62, %v1932_v62  ;;  %1938 = vst.msk [vmem:[#allocation3] sm:$0x3] %vm1937_vm5, %v1932_v62 }
 0x176   :  { %2354 = vmatmul.mubr.msk.bf16.vlgmr.msra.gmra.mrb[16].mxu0 %vm1963_vm6, %v1939_v63 }
 0x177   :  { %2503 = shalt.err (!%p2500_p4)
}
 0x178   :  { %s2504_s0 = scalar_lea.hbm %s3146_s5, 32 }
 0x179   :  { %p2505_p5 = scmp.ne.s32.totalorder %s3146_s5, %s2504_s0  ;;  %p2508_p6 = scmp.lt.u32.totalorder %s2504_s0, %s3146_s5 }
 0x17b   :  { %p2510_p7 = pnand %p2508_p6, %p2505_p5 }
 0x17d   :  { %2513 = shalt.err (!%p2510_p7)
}
 0x17e   :  { %2018 = dma.vmem_to_hbm [thread:$0]  %s2016_s3, 32, %s3146_s5, [#allocation4]   ;;  %v2166_v0 = vld [vmem:[%s3145_s4] ss:$0 sm:$0xff]  ;;  %vm2007_vm7 = vcmask 517120  }
 0x17f   :  { %s2544_s19 = smov [#allocation5]  }
 0x180   :  { %s2025_s20 = sshll.u32 %s2544_s19, 4  ;;  %s2026_s20 = int_to_ptr.vmem [resolvable:$true] %s2025_s20 }
 0x181   :  { %s2514_s21 = scalar_lea.vmem %s2026_s20, 32  ;;  %p2519_p9 = scmp.lt.s32.totalorder %s2026_s20, %s2026_s20 }
 0x182   :  { %p2515_p8 = scmp.ne.s32.totalorder %s2026_s20, %s2514_s21  ;;  %p2520_p10 = scmp.lt.s32.totalorder %s2514_s21, %s2514_s21 }
 0x184   :  { %p2521_p11 = por %p2520_p10, %p2519_p9 }
 0x186   :  { %p2522_p12 = pnand %p2521_p11, %p2515_p8 }
 0x249   :  { %v2001_v1 = vpop.f32.mrb[16].mxu0 }
 0x24a   :  { %v2002_v2 = vadd.f32 %v2166_v0, %v2001_v1  ;;  %v2355_v3 = vpop.f32.mrb[17].mxu0 }
 0x24b   :  { %v2004_v4 = vpop.f32.mrb[18].mxu0 }
 0x24c   :  { %v2356_v5 = vpop.f32.mrb[19].mxu0  ;;  %2008 = vst.msk [vmem:[#allocation5] sm:$0x3] %vm2007_vm7, %v2002_v2 }
 0x24d   :  { %2525 = shalt.err (!%p2522_p12)
}
 0x24e   :  { %s2526_s4 = scalar_lea.hbm %s3147_s6, 32 }
 0x24f   :  { %p2527_p13 = scmp.ne.s32.totalorder %s3147_s6, %s2526_s4  ;;  %p2530_p0 = scmp.lt.u32.totalorder %s2526_s4, %s3147_s6 }
 0x251   :  { %p2532_p1 = pnand %p2530_p0, %p2527_p13 }
 0x253   :  { %2535 = shalt.err (!%p2532_p1)
}
 0x254   :  { %2028 = dma.vmem_to_hbm [thread:$0]  %s2026_s20, 32, %s3147_s6, [#allocation6]  }
 0x255   :  { %2536 = dma.done.wait [#allocation4], 32  }
 0x256   :  { %2537 = vsyncadd [#allocation4], 4294967264 }
 0x257   :  { %2538 = dma.done.wait [#allocation6], 32  }
 0x258   :  { %2539 = vsyncadd [#allocation6], 4294967264 }
 0x259   :  { %2035 = vsyncpa [#allocation4], 1 }
 0x25a   :  { %2036 = vsyncpa [#allocation6], 1 }

</bundles_post_ra>
